<compile_context>
chip_gen: v7x
topology: tpu7x:2x2x1
jax: 0.10.0
libtpu: 0.0.40
codegen_flags: <defaults>
</compile_context>

<pallas_src>
import jax
import jax.numpy as jnp
from jax.experimental import pallas as pl
from jax.experimental.pallas import tpu as pltpu

_LANE = 128                 # lane-axis multiple for lane-dense slabs
_SUBLANE = 8                # sublane-axis multiple for row tiles
_MAX_TW = 512               # preferred lane-dense slab width (multiple of 128)
_TILE_BYTES = 1 << 20       # ~1 MiB per input block (>=85% of HBM roofline class)
_FAST_PATH_MAX = 16384      # elements: below this, fused XLA beats any kernel launch
_VMEM_LIMIT = 32 * 1024 * 1024
_VMEM_BUDGET = 24 * 1024 * 1024  # 2 operands x 2 buffers x block bytes must fit here

_SQRT_2_OVER_PI = 0.7978845608028654
_GELU_C3 = 0.044715 * _SQRT_2_OVER_PI  # folded constant: 0.035677408136300125


def _round_up(x, m):
    return ((x + m - 1) // m) * m


def _gelu_convt_kernel(wb_ref, x_ref, o_ref):
    # ConvTranspose2d(1,1,(1,1),stride=1) == x * w + b with scalar weight / bias.
    v1 = x_ref[...] * wb_ref[0] + wb_ref[1]
    half = 0.5 * v1
    # tanh-GELU with the 0.044715 * sqrt(2/pi) constant pre-folded (one vmul saved).
    inner = v1 * (_SQRT_2_OVER_PI + _GELU_C3 * (v1 * v1))
    o_ref[...] = half * (jnp.tanh(inner) + 1.0)


def _affine_tanh_gelu(x, weight, bias):
    """Fused XLA fallback / fast path (identical math to the PyTorch graph)."""
    v1 = x * weight + bias
    return 0.5 * v1 * (
        jnp.tanh((v1 + 0.044715 * (v1 * v1 * v1)) * _SQRT_2_OVER_PI) + 1.0)


def _apply_squeezes(out):
    # PyTorch: squeeze(-1) -> squeeze(-1) -> squeeze(0)  (only drops size-1 dims).
    if out.shape[-1] == 1:
        out = out.reshape(out.shape[:-1])
    if out.shape[-1] == 1:
        out = out.reshape(out.shape[:-1])
    if out.shape[0] == 1:
        out = out.reshape(out.shape[1:])
    return out


def _pick_row_tile(rows, tw):
    """Row tile: multiple of 8 (or the full row count), capped at ~1 MiB blocks,
    and chosen so the grid has >= 2 steps when possible (v7x megacore sharding)."""
    if rows <= _SUBLANE:
        return rows
    cap = max(_SUBLANE, (_TILE_BYTES // (tw * 4)) // _SUBLANE * _SUBLANE)
    th = min(_round_up(pl.cdiv(rows, 2), _SUBLANE), cap)
    if th >= rows:
        th = rows
    return th


def model_forward(x_nchw, weight, bias, *, force_pallas=False):
    """x_nchw: (N, 1, H, W) float32; weight/bias: scalar ConvTranspose2d params."""
    n, c, h, w = x_nchw.shape
    assert c == 1, "module is defined for 1 input / 1 output channel"
    x = x_nchw.astype(jnp.float32)
    total = n * c * h * w

    # Tiny-input fast path: wall time is pure launch/DMA overhead; fused XLA wins.
    if not force_pallas and total <= _FAST_PATH_MAX:
        return _apply_squeezes(_affine_tanh_gelu(x, weight, bias))

    # Zero-copy 2-D view of x: prefer a lane-dense slab (unmasked vector stores),
    # otherwise the natural (N*H, W) view whose block covers the full last dim.
    tw = None
    for cand in (_MAX_TW, 256, _LANE):
        if total % cand == 0:
            tw = cand
            break
    if tw is not None:
        x2d = x.reshape(total // tw, tw)        # free reshape, no pad, no slice
    else:
        tw = w
        x2d = x.reshape(n * c * h, w)           # block last dim == full W (legal)
    rows = x2d.shape[0]
    th = _pick_row_tile(rows, tw)

    # Keep double-buffered in+out blocks comfortably under the v7x VMEM ceiling;
    # degenerate geometries (huge W, few rows) fall back to the fused XLA path.
    if 2 * 2 * th * tw * 4 > _VMEM_BUDGET:
        return _apply_squeezes(_affine_tanh_gelu(x, weight, bias))

    # Merge weight + bias into a single (2,) SMEM operand (one scalar DMA).
    wb = jnp.stack([jnp.asarray(weight, jnp.float32),
                    jnp.asarray(bias, jnp.float32)])

    out2d = pl.pallas_call(
        _gelu_convt_kernel,
        out_shape=jax.ShapeDtypeStruct(x2d.shape, jnp.float32),
        grid=(pl.cdiv(rows, th),),
        in_specs=[
            pl.BlockSpec(memory_space=pltpu.MemorySpace.SMEM),  # (2,) scalars [w, b]
            pl.BlockSpec((th, tw), lambda i: (i, 0)),           # row tiles of the view
        ],
        out_specs=pl.BlockSpec((th, tw), lambda i: (i, 0)),
        compiler_params=pltpu.CompilerParams(
            dimension_semantics=("parallel",),
            vmem_limit_bytes=_VMEM_LIMIT,
        ),
        cost_estimate=pl.CostEstimate(
            flops=8 * total, transcendentals=total, bytes_accessed=8 * total),
    )(wb, x2d)

    return _apply_squeezes(out2d.reshape(n, c, h, w))


def _reference(x_nchw, weight, bias):
    v1 = x_nchw * weight + bias
    v9 = 0.5 * v1 * (jnp.tanh((v1 + 0.044715 * v1 ** 3) * _SQRT_2_OVER_PI) + 1.0)
    return _apply_squeezes(v9)


if __name__ == "__main__":
    key = jax.random.PRNGKey(0)
    kx1, kx2, kx3, kw, kb = jax.random.split(key, 5)

    # ConvTranspose2d(1,1,(1,1)) has a scalar weight & bias; fan_in = 1 -> U(-1, 1).
    weight = jax.random.uniform(kw, (), jnp.float32, -1.0, 1.0)
    bias = jax.random.uniform(kb, (), jnp.float32, -1.0, 1.0)

    # Case 1: the module's literal contract, x of shape (1,1,1,1) -> output (1,).
    # Uses the tiny-input fused-XLA fast path (no kernel launch for ~10 flops).
    x1 = jax.random.normal(kx1, (1, 1, 1, 1), dtype=jnp.float32)
    out1 = model_forward(x1, weight, bias)
    jax.block_until_ready(out1)
    ref1 = _reference(x1, weight, bias)
    assert out1.shape == (1,), out1.shape
    assert jnp.allclose(out1, ref1, atol=1e-6), (out1, ref1)

    # Case 2: lane-dense slab path (total % 512 == 0), 2-step parallel grid.
    x2 = jax.random.normal(kx2, (1, 1, 64, 128), dtype=jnp.float32)
    out2 = model_forward(x2, weight, bias, force_pallas=True)
    jax.block_until_ready(out2)
    ref2 = _reference(x2, weight, bias)
    assert out2.shape == (1, 64, 128), out2.shape
    assert jnp.allclose(out2, ref2, atol=1e-5), float(jnp.max(jnp.abs(out2 - ref2)))

    # Case 3: ragged path — W not a multiple of 128, uneven last row tile
    # (block last dim == full W; no pad and no output slice anywhere).
    x3 = jax.random.normal(kx3, (1, 1, 40, 70), dtype=jnp.float32)
    out3 = model_forward(x3, weight, bias, force_pallas=True)
    jax.block_until_ready(out3)
    ref3 = _reference(x3, weight, bias)
    assert out3.shape == (1, 40, 70), out3.shape
    assert jnp.allclose(out3, ref3, atol=1e-5), float(jnp.max(jnp.abs(out3 - ref3)))

    print("KERNEL_OK")
</pallas_src>

<mosaic_0001>
module attributes {stable_mosaic.version = 11 : i64} {
  func.func @_gelu_convt_kernel(%arg0: i32, %arg1: memref<2xf32, #tpu.memory_space<smem>>, %arg2: memref<8x512xf32, #tpu.memory_space<vmem>>, %arg3: memref<8x512xf32, #tpu.memory_space<vmem>>) attributes {dimension_semantics = [#tpu.dimension_semantics<parallel>], iteration_bounds = array<i64: 2>, scalar_prefetch = 0 : i64, scratch_operands = 0 : i64, tpu.core_type = #tpu.core_type<tc>, window_params = [{transform_indices = @transform_0, window_bounds = array<i64: 2>}, {transform_indices = @transform_1, window_bounds = array<i64: 8, 512>}, {transform_indices = @transform_2, window_bounds = array<i64: 8, 512>}]} {
    %c0 = arith.constant 0 : index
    %c0_0 = arith.constant 0 : index
    %0 = vector.load %arg2[%c0, %c0_0] : memref<8x512xf32, #tpu.memory_space<vmem>>, vector<8x512xf32>
    %c0_1 = arith.constant 0 : index
    %1 = memref.load %arg1[%c0_1] : memref<2xf32, #tpu.memory_space<smem>>
    %2 = vector.broadcast %1 : f32 to vector<8x512xf32>
    %3 = arith.mulf %0, %2 : vector<8x512xf32>
    %c1 = arith.constant 1 : index
    %4 = memref.load %arg1[%c1] : memref<2xf32, #tpu.memory_space<smem>>
    %5 = vector.broadcast %4 : f32 to vector<8x512xf32>
    %6 = arith.addf %3, %5 : vector<8x512xf32>
    %cst = arith.constant 5.000000e-01 : f32
    %7 = vector.broadcast %cst : f32 to vector<8x512xf32>
    %8 = arith.mulf %7, %6 : vector<8x512xf32>
    %9 = arith.mulf %6, %6 : vector<8x512xf32>
    %cst_2 = arith.constant 0.0356774069 : f32
    %10 = vector.broadcast %cst_2 : f32 to vector<8x512xf32>
    %11 = arith.mulf %10, %9 : vector<8x512xf32>
    %cst_3 = arith.constant 0.797884583 : f32
    %12 = vector.broadcast %cst_3 : f32 to vector<8x512xf32>
    %13 = arith.addf %12, %11 : vector<8x512xf32>
    %14 = arith.mulf %6, %13 : vector<8x512xf32>
    %15 = math.tanh %14 : vector<8x512xf32>
    %cst_4 = arith.constant 1.000000e+00 : f32
    %16 = vector.broadcast %cst_4 : f32 to vector<8x512xf32>
    %17 = arith.addf %15, %16 : vector<8x512xf32>
    %18 = arith.mulf %8, %17 : vector<8x512xf32>
    %c0_5 = arith.constant 0 : index
    %c0_6 = arith.constant 0 : index
    %19 = vector.load %arg3[%c0_5, %c0_6] : memref<8x512xf32, #tpu.memory_space<vmem>>, vector<8x512xf32>
    tpu.vector_store %arg3[%c0_5, %c0_6], %18 {strides = array<i32>} : memref<8x512xf32, #tpu.memory_space<vmem>>, vector<8x512xf32>,
    return
  }
  func.func @transform_0(%arg0: i32) -> i32 {
    %c0_i32 = arith.constant 0 : i32
    %c0_i32_0 = arith.constant 0 : i32
    return %c0_i32 : i32
  }
  func.func @transform_1(%arg0: i32) -> (i32, i32) {
    %c0_i32 = arith.constant 0 : i32
    %c0_i32_0 = arith.constant 0 : i32
    return %arg0, %c0_i32 : i32, i32
  }
  func.func @transform_2(%arg0: i32) -> (i32, i32) {
    %c0_i32 = arith.constant 0 : i32
    %c0_i32_0 = arith.constant 0 : i32
    return %arg0, %c0_i32 : i32, i32
  }
}

</mosaic_0001>

<bundles_post_ra>
// kernel: tpu_custom_call.1
= control target key start
LH: loop header
LB: loop body
LE: loop exit
PB: predicated region body
PF: predicated region fallthrough
CT: control target
= control target key end

     0   :  { %7 = vsyncpa [#allocation5], 0  ;;  %s747_s0 = inlined_call_operand.hbm [shape: f32[2], index: 0, kind: input, shape index: {}]   ;;  %s748_s1 = inlined_call_operand.hbm [shape: f32[16,512], index: 1, kind: input, shape index: {}]   ;;  %s749_s2 = inlined_call_operand.hbm [shape: f32[16,512], index: 2, kind: output, shape index: {}]  }
   0x1   :  { %8 = vsyncpa [#allocation3], 0 }
   0x2   :  { %10 = vsyncpa [#allocation3 + $0x1], 0 }
   0x3   :  { %11 = vsyncpa [#allocation4], 0 }
   0x4   :  { %13 = vsyncpa [#allocation4 + $0x1], 0  ;;  %s538_s9 = smov 0   ;;  %s540_s10 = smov 0  }
   0x5   :  { %s542_s11 = smov 0   ;;  %s544_s12 = smov 0  }
   0x6 LB: > { %s559_s13 = sadd.s32 4294967295, %s518_s12   ;;  %s321_s14 = sadd.s32 4294967294, %s518_s12   ;;  %s518_s12 = sphi %s544_s12, %s770_s12   ;;  %s514_s11 = sphi %s542_s11, %s769_s11   ;;  %s510_s10 = sphi %s540_s10, %s768_s10   ;;  %s506_s9 = sphi %s538_s9, %s767_s9  }
   0x7   : > { %p60_p0 = scmp.ne.s32.totalorder %s510_s10, %s506_s9  ;;  %p750_p1 = scmp.eq.s32.totalorder %s559_s13, 0 }
   0x8   : > { %p90_p3 = scmp.eq.s32.totalorder %s321_s14, 1  ;;  %p322_p5 = scmp.ge.s32.totalorder %s518_s12, 1 }
   0x9   : > { %p568_p4 = por %p750_p1, %p60_p0  ;;  %p97_p7 = scmp.lt.s32.totalorder %s518_s12, 3 }
   0xa   : > { %p573_p6 = por %p90_p3, %p60_p0  ;;  %s584_s18 = sadd.s32 1, %s518_s12  }
   0xb   : > { %s753_s15 = scalar_select %p568_p4, 1, 0 }
   0xc   : > { %s754_s16 = scalar_select %p573_p6, 1, 0 }
   0xd   : > { %p578_p8 = pnand %p322_p5, %p97_p7  ;;  %s44_s19 = ssub.s32 %s518_s12, %s584_s18 }
   0xe   : > { %s47_s20 = sadd.s32 1, %s514_s11  ;;  %p597_p12 = scmp.eq.s32.totalorder %s44_s19, 0 }
   0xf   : > { %p348_p10 = pneg %p578_p8  ;;  %p54_p13 = scmp.ne.s32.totalorder %s514_s11, %s510_s10 }
  0x10   : > { %p55_p0 = scmp.eq.s32.totalorder %s518_s12, 0  ;;  %p361_p3 = scmp.lt.s32.totalorder %s518_s12, 2 }
  0x11   : > { %p593_p11 = pnand %p348_p10, %p750_p1  ;;  %s405_s25 = scalar_lea.hbm %s747_s0, 16 }
  0x12   : > { %p406_p5 = scmp.ne.s32.totalorder %s747_s0, %s405_s25  ;;  %p412_p1 = scmp.lt.u32.totalorder %s405_s25, %s747_s0 }
  0x13   : > { %p407_p7 = pneg %p593_p11 }
  0x15   : > { %p408_p10 = pnand %p407_p7, %p406_p5 }
  0x17   : > { %p409_p9 = pneg %p408_p10 }
  0x19   : > { %p414_p2 = pnand %p412_p1, %p409_p9 }
  0x1b   : > { %417 = shalt.err (!%p414_p2)
}
  0x1c   : > { %s520_s30 = smov [#allocation2]   ;;  %p56_p1 = por %p55_p0, %p54_p13 }
  0x1d   : > { %351 = dma.hbm_to_smem (!%p593_p11), %s747_s0, 16, %s520_s30, [#allocation5]  }
  0x1e   : > { %s624_s5 = scalar_select %p597_p12, %s514_s11, %s47_s20  }
  0x1f   : > { %p758_p2 = scmp.eq.s32.totalorder %s559_s13, 1  ;;  %s119_s7 = sand.u32 1, %s514_s11  }
  0x20   : > { %s338_s8 = sshll.u32 %s518_s12, 9  ;;  %s325_s14 = sshll.u32 %s119_s7, 5 }
  0x21   : > { %p636_p9 = por %p758_p2, %p54_p13  ;;  %s645_s23 = scalar_lea.hbm %s748_s1, %s338_s8 }
  0x22   : > { %s123_s20 = scalar_lea.vmem [#allocation6], %s325_s14  ;;  %p649_p11 = pnand %p361_p3, %p56_p1 }
  0x23   : > { %s759_s6 = scalar_select %p636_p9, 1, 0 }
  0x24   : > { %s131_s22 = sshll.u32 %s123_s20, 4  ;;  %s120_s25 = scalar_lea.sflag [#allocation3], %s119_s7  ;;  %s653_s22 = int_to_ptr.vmem [resolvable:$true] %s131_s22 }
  0x25   : > { %s418_s26 = scalar_lea.hbm %s645_s23, 512  ;;  %p420_p13 = pneg %p649_p11 }
  0x26   : > { %p419_p12 = scmp.ne.s32.totalorder %s645_s23, %s418_s26  ;;  %s423_s29 = scalar_lea.hbm %s748_s1, 1024 }
  0x27   : > { %p424_p3 = scmp.lt.u32.totalorder %s645_s23, %s748_s1  ;;  %p425_p7 = scmp.lt.u32.totalorder %s423_s29, %s418_s26 }
  0x28   : > { %p421_p0 = pnand %p420_p13, %p419_p12  ;;  %p427_p1 = scmp.lt.u32.totalorder %s418_s26, %s645_s23 }
  0x29   : > { %p426_p10 = por %p425_p7, %p424_p3 }
  0x2a   : > { %p422_p5 = pneg %p421_p0 }
  0x2b   : > { %p428_p2 = por %p427_p1, %p426_p10 }
  0x2d   : > { %p429_p6 = pnand %p428_p2, %p422_p5 }
  0x2f   : > { %432 = shalt.err (!%p429_p6)
}
  0x30   : > { %s433_s4 = scalar_lea.vmem %s653_s22, 512  ;;  %s521_s7 = smov [#allocation6]  }
  0x31   : > { %p434_p12 = scmp.ne.s32.totalorder %s653_s22, %s433_s4  ;;  %s438_s8 = sshll.u32 %s521_s7, 4  ;;  %s439_s8 = int_to_ptr.vmem [resolvable:$false] %s438_s8 }
  0x32   : > { %s440_s14 = scalar_lea.vmem %s439_s8, 1024  ;;  %p441_p4 = scmp.lt.s32.totalorder %s653_s22, %s439_s8 }
  0x33   : > { %p436_p0 = pnand %p434_p12, %p420_p13  ;;  %p442_p3 = scmp.lt.s32.totalorder %s440_s14, %s433_s4 }
  0x35   : > { %p437_p9 = pneg %p436_p0  ;;  %p443_p7 = por %p442_p3, %p441_p4 }
  0x37   : > { %p444_p10 = pnand %p443_p7, %p437_p9 }
  0x39   : > { %447 = shalt.err (!%p444_p10)
}
  0x3a   : > { %355 = dma.hbm_to_vmem [thread:$0]  (!%p649_p11), %s645_s23, 512, %s653_s22, %s120_s25  }
  0x3b   : > { %140 = sbr.rel (%p578_p8) target bundleno = 124 (0x7c), region = 28  ;;  %p761_p6 = scmp.eq.s32.totalorder (!%p578_p8), %s559_s13, 0 }
  0x42   : > { %493 = dma.done.wait (%p761_p6), [#allocation5], 16   ;;  %p762_p13 = pmov %p761_p6 }
  0x43   : > { %s687_s19 = sand.u32 1, %s510_s10   ;;  %p763_p4 = scmp.ne.s32.totalorder %s753_s15, 0 }
  0x44   : > { %495 = vsyncadd (%p762_p13), [#allocation5], 4294967280  ;;  %s330_s21 = sshll.u32 %s687_s19, 5  ;;  %s147_s20 = scalar_lea.sflag [#allocation3], %s687_s19 }
  0x45   : > { %s150_s23 = scalar_lea.vmem [#allocation6], %s330_s21 }
  0x46   : > { %497 = dma.done.wait (%p763_p4), %s147_s20, 512  }
  0x47   : > { %499 = vsyncadd (%p763_p4), %s147_s20, 4294966784 }
  0x48   : > { %155 = sfence }
  0x49   : > { %s176_s17 = sld [smem:[#allocation2]]  ;;  %s332_s22 = sld [smem:[#allocation2 + $0x1]]  ;;  %v172_v0 = vld [vmem:[%s150_s23] sm:$0xff]  ;;  %v173_v1 = vld [vmem:[%s150_s23 + $0x8] sm:$0xff]  ;;  %v174_v2 = vld [vmem:[%s150_s23 + $0x10] sm:$0xff] }
  0x4a   : > { %v175_v3 = vld [vmem:[%s150_s23 + $0x18] sm:$0xff]  ;;  %s339_s15 = sshll.u32 %s559_s13, 9  ;;  %s171_s24 = scalar_lea.vmem [#allocation7], %s330_s21 }
  0x4b   : > { %s239_s25 = sshll.u32 %s171_s24, 4  ;;  %s703_s28 = scalar_lea.hbm %s749_s2, %s339_s15  ;;  %s705_s25 = int_to_ptr.vmem [resolvable:$true] %s239_s25 }
  0x4c   : > { %s225_s13 = scalar_lea.sflag [#allocation4], %s687_s19  ;;  %s448_s29 = scalar_lea.vmem %s705_s25, 512 }
  0x4d   : > { %p449_p8 = scmp.ne.s32.totalorder %s705_s25, %s448_s29  ;;  %p764_p9 = scmp.ne.s32.totalorder %s759_s6, 0 }
  0x4e   : > { %s522_s30 = smov [#allocation7]  }
  0x4f   : > { %v177_v4 = vstv %s176_s17  ;;  %v183_v6 = vstv %s332_s22  ;;  %p450_p11 = pnand %p449_p8, %p764_p9  ;;  %s452_s3 = sshll.u32 %s522_s30, 4  ;;  %s453_s3 = int_to_ptr.vmem [resolvable:$false] %s452_s3 }
  0x50   : > { %v178_v5 = vmul.f32 %v177_v4, %v172_v0  ;;  %v179_v7 = vmul.f32 %v177_v4, %v173_v1  ;;  %v180_v8 = vmul.f32 %v177_v4, %v174_v2  ;;  %v181_v9 = vmul.f32 %v177_v4, %v175_v3  ;;  %s454_s4 = scalar_lea.vmem %s453_s3, 1024  ;;  %p455_p1 = scmp.lt.s32.totalorder %s705_s25, %s453_s3 }
  0x51   : > { %p451_p5 = pneg %p450_p11  ;;  %p456_p2 = scmp.lt.s32.totalorder %s454_s4, %s448_s29 }
  0x52   : > { %v184_v10 = vadd.f32 %v183_v6, %v178_v5  ;;  %v185_v11 = vadd.f32 %v183_v6, %v179_v7  ;;  %v186_v12 = vadd.f32 %v183_v6, %v180_v8  ;;  %v187_v13 = vadd.f32 %v183_v6, %v181_v9 }
  0x53   : > { %p457_p12 = por %p456_p2, %p455_p1 }
  0x54   : > { %v192_v14 = vmul.f32 %v184_v10, %v184_v10  ;;  %v193_v15 = vmul.f32 %v185_v11, %v185_v11  ;;  %v194_v16 = vmul.f32 %v186_v12, %v186_v12  ;;  %v195_v17 = vmul.f32 %v187_v13, %v187_v13 }
  0x55   : > { %v188_v30 = vmul.f32 0.5, %v184_v10  ;;  %v189_v32 = vmul.f32 0.5, %v185_v11  ;;  %v190_v35 = vmul.f32 0.5, %v186_v12  ;;  %v191_v38 = vmul.f32 0.5, %v187_v13  ;;  %p458_p0 = pnand %p457_p12, %p451_p5 }
  0x56   : > { %v196_v18 = vmul.f32 0.035677407, %v192_v14  ;;  %v197_v19 = vmul.f32 0.035677407, %v193_v15  ;;  %v198_v20 = vmul.f32 0.035677407, %v194_v16 }
  0x57   : > { %v199_v21 = vmul.f32 0.035677407, %v195_v17 }
  0x58   : > { %v200_v22 = vadd.f32 0.7978846, %v196_v18  ;;  %v201_v23 = vadd.f32 0.7978846, %v197_v19  ;;  %v202_v24 = vadd.f32 0.7978846, %v198_v20 }
  0x59   : > { %v203_v25 = vadd.f32 0.7978846, %v199_v21 }
  0x5a   : > { %v204_v26 = vmul.f32 %v200_v22, %v184_v10  ;;  %v205_v27 = vmul.f32 %v201_v23, %v185_v11  ;;  %v206_v28 = vmul.f32 %v202_v24, %v186_v12 }
  0x5b   : > { %v207_v29 = vmul.f32 %v203_v25, %v187_v13 }
  0x5c   : > { %397 = vtanh.f32 %v204_v26 }
  0x5d   : > { %399 = vtanh.f32 %v205_v27 }
  0x5e   : > { %401 = vtanh.f32 %v206_v28 }
  0x5f   : > { %403 = vtanh.f32 %v207_v29 }
  0x66   : > { %v398_v31 = vpop.eup %397 }
  0x67   : > { %v400_v33 = vpop.eup %399  ;;  %v212_v34 = vadd.f32 1.0, %v398_v31 }
  0x68   : > { %v402_v36 = vpop.eup %401  ;;  %v213_v37 = vadd.f32 1.0, %v400_v33 }
  0x69   : > { %v404_v39 = vpop.eup %403  ;;  %v216_v40 = vmul.f32 %v212_v34, %v188_v30  ;;  %v214_v41 = vadd.f32 1.0, %v402_v36 }
  0x6a   : > { %v217_v42 = vmul.f32 %v213_v37, %v189_v32  ;;  %v215_v43 = vadd.f32 1.0, %v404_v39 }
  0x6b   : > { %220 = vst [vmem:[%s171_s24] sm:$0xff] %v216_v40  ;;  %v218_v44 = vmul.f32 %v214_v41, %v190_v35 }
  0x6c   : > { %221 = vst [vmem:[%s171_s24 + $0x8] sm:$0xff] %v217_v42  ;;  %v219_v45 = vmul.f32 %v215_v43, %v191_v38 }
  0x6d   : > { %222 = vst [vmem:[%s171_s24 + $0x10] sm:$0xff] %v218_v44 }
  0x6e   : > { %223 = vst [vmem:[%s171_s24 + $0x18] sm:$0xff] %v219_v45 }
  0x6f   : > { %461 = shalt.err (!%p458_p0)
}
  0x70   : > { %s462_s7 = scalar_lea.hbm %s703_s28, 512  ;;  %s466_s19 = scalar_lea.hbm %s749_s2, 1024 }
  0x71   : > { %p463_p3 = scmp.ne.s32.totalorder %s703_s28, %s462_s7  ;;  %p467_p6 = scmp.lt.u32.totalorder %s703_s28, %s749_s2 }
  0x72   : > { %p468_p13 = scmp.lt.u32.totalorder %s466_s19, %s462_s7  ;;  %p470_p8 = scmp.lt.u32.totalorder %s462_s7, %s703_s28 }
  0x73   : > { %p464_p7 = pnand %p463_p3, %p764_p9 }
  0x74   : > { %p469_p4 = por %p468_p13, %p467_p6 }
  0x75   : > { %p465_p10 = pneg %p464_p7 }
  0x76   : > { %p471_p11 = por %p470_p8, %p469_p4 }
  0x78   : > { %p472_p5 = pnand %p471_p11, %p465_p10 }
  0x7a   : > { %475 = shalt.err (!%p472_p5)
}
  0x7b   : > { %346 = dma.vmem_to_hbm [thread:$0]  (%p764_p9), %s705_s25, 512, %s703_s28, %s225_s13  }
  0x7c PF: > { %s251_s23 = sand.u32 1, %s506_s9   ;;  %p765_p1 = scmp.ne.s32.totalorder %s754_s16, 0 }
  0x7d   : > { %p766_p2 = scmp.ge.s32.totalorder %s518_s12, 2  ;;  %s252_s17 = scalar_lea.sflag [#allocation4], %s251_s23 }
  0x7f   : > { %p357_p12 = pnand %p766_p2, %p765_p1 }
  0x81   : > { %501 = dma.done.wait (!%p357_p12), %s252_s17, 512  }
  0x82   : > { %503 = vsyncadd (!%p357_p12), %s252_s17, 4294966784  ;;  %p16_p0 = scmp.ge.s32.totalorder %s584_s18, 4   ;;  %s767_s9 = smov %s510_s10 }
  0x83   : > { %s768_s10 = smov %s514_s11  ;;  %s769_s11 = smov %s624_s5 }
  0x84   : > { %s770_s12 = smov %s584_s18  ;;  %18 = sbr.rel (!%p16_p0) target bundleno = 6 (0x6), region = 78 }
  0x8b   :  { %257 = vsyncpa [#allocation3], 1 }
  0x8c   :  { %259 = vsyncpa [#allocation3 + $0x1], 1 }
  0x8d   :  { %260 = vsyncpa [#allocation4], 1 }
  0x8e   :  { %262 = vsyncpa [#allocation4 + $0x1], 1 }
  0x8f   :  { %263 = vsyncpa [#allocation5], 1 }
  0x90   :  { %265 = vsyncpa [#allocation5 + $0x1], 1 }

</bundles_post_ra>
